<compile_context>
chip_gen: v6e
topology: v6e:2x2x1
jax: 0.10.0
libtpu: 0.0.40
codegen_flags: <defaults>
</compile_context>

<pallas_src>
import jax
import jax.numpy as jnp
from jax import lax
from jax.experimental import pallas as pl
from jax.experimental.pallas import tpu as pltpu

LANES = 128
VMEM_LIMIT = 32 * 1024 * 1024   # <= 32 MiB scoped VMEM: safe on v5e/v6e/v7x


def _round_up(a, b):
    return ((a + b - 1) // b) * b


# --------------------------------------------------------------------------- #
# Pallas kernel 1: Multispike (the module under test)
#   spike(x) = floor(clamp(x, 0, 4) + 0.5), emitted as bf16 (exact for 0..4)
# --------------------------------------------------------------------------- #
def _multispike_kernel(x_ref, o_ref):
    o_ref[...] = jnp.floor(jnp.clip(x_ref[...], 0.0, 4.0) + 0.5).astype(o_ref.dtype)


def multispike(x):
    """Elementwise Multispike forward via Pallas; bf16 output, same shape."""
    shape = x.shape
    total = x.size
    rem = total % LANES
    xf = x.reshape(-1)
    if rem:                                   # lane remainder only (< 128 elems)
        xf = jnp.pad(xf, (0, LANES - rem))
    rows = xf.size // LANES
    xf = xf.reshape(rows, LANES)

    # Big tiles (<= 8192 rows ~= 4 MiB f32 per input buffer) but ~8 grid steps
    # so both v7x TensorCores get >= 2 pipelined steps; ragged tail handled by
    # Pallas edge masking (no row padding / output slicing).
    tr = min(8192, max(8, _round_up(pl.cdiv(rows, 8), 8)))
    grid = pl.cdiv(rows, tr)

    out = pl.pallas_call(
        _multispike_kernel,
        out_shape=jax.ShapeDtypeStruct((rows, LANES), jnp.bfloat16),
        grid=(grid,),
        in_specs=[pl.BlockSpec((tr, LANES), lambda i: (i, 0))],
        out_specs=pl.BlockSpec((tr, LANES), lambda i: (i, 0)),
        compiler_params=pltpu.CompilerParams(
            dimension_semantics=("parallel",),
            vmem_limit_bytes=VMEM_LIMIT),
        cost_estimate=pl.CostEstimate(
            flops=4 * rows * LANES, transcendentals=0,
            bytes_accessed=rows * LANES * (4 + 2)),
    )(xf)

    out = out.reshape(-1)
    if rem:
        out = out[:total]
    return out.reshape(shape)


# --------------------------------------------------------------------------- #
# Pallas kernel 2: k=2,s=2 down conv as bf16 GEMM + folded BN, fused spike out
# --------------------------------------------------------------------------- #
def _gemm_bn_spike_kernel(p_ref, w_ref, shift_ref, o_ref, s_ref):
    acc = jnp.dot(p_ref[...], w_ref[...], preferred_element_type=jnp.float32)
    out = acc + shift_ref[...]
    o_ref[...] = out
    s_ref[...] = jnp.floor(jnp.clip(out, 0.0, 4.0) + 0.5).astype(s_ref.dtype)


def down_conv_bn_spike(spk, w_bf16, shift):
    """Spiked input -> conv(k=2,s=2,p=0) -> BN; emits (f32 value, bf16 spike)."""
    n, d, h, w, c = spk.shape
    do, ho, wo = d // 2, h // 2, w // 2
    # stride == kernel: non-overlapping patches -> pure reshape/transpose
    # (patch tensor is exactly 1x the input size, no 27x blow-up).
    patches = (spk.reshape(n, do, 2, ho, 2, wo, 2, c)
                  .transpose(0, 1, 3, 5, 2, 4, 6, 7)
                  .reshape(n * do * ho * wo, 8 * c))
    m, k = patches.shape
    cout = w_bf16.shape[-1]

    tm = min(1024, max(8, _round_up(pl.cdiv(m, 8), 8)))
    grid = pl.cdiv(m, tm)                    # ragged edge handled by Pallas

    val, spk_out = pl.pallas_call(
        _gemm_bn_spike_kernel,
        out_shape=(jax.ShapeDtypeStruct((m, cout), jnp.float32),
                   jax.ShapeDtypeStruct((m, cout), jnp.bfloat16)),
        grid=(grid,),
        in_specs=[pl.BlockSpec((tm, k), lambda i: (i, 0)),
                  pl.BlockSpec((k, cout), lambda i: (0, 0)),
                  pl.BlockSpec((1, cout), lambda i: (0, 0))],
        out_specs=(pl.BlockSpec((tm, cout), lambda i: (i, 0)),
                   pl.BlockSpec((tm, cout), lambda i: (i, 0))),
        compiler_params=pltpu.CompilerParams(
            dimension_semantics=("parallel",),
            vmem_limit_bytes=VMEM_LIMIT),
        cost_estimate=pl.CostEstimate(
            flops=2 * m * k * cout, transcendentals=0,
            bytes_accessed=m * k * 2 + k * cout * 2 + cout * 4 + m * cout * 6),
    )(patches, w_bf16, shift)

    return (val.reshape(n, do, ho, wo, cout),
            spk_out.reshape(n, do, ho, wo, cout))


# --------------------------------------------------------------------------- #
# Pallas kernel 3: 3x3x3 / s=1 / p=1 conv with in-kernel tap reduction
#   grid = (batch, out_depth, kd); kd is the "arbitrary" reduction axis whose
#   index_map picks the shifted padded depth row; (kh, kw) taps unrolled
#   in-kernel; folded BN + optional residual + fused Multispike in epilogue.
# --------------------------------------------------------------------------- #
def _conv3_taps(x_row, w_kd, acc):
    """Accumulate the 9 (kh, kw) taps of one depth tap into the f32 acc."""
    hp, wp, cin = x_row.shape
    h, w = hp - 2, wp - 2
    for t in range(9):
        kh, kw = divmod(t, 3)
        patch = x_row[kh:kh + h, kw:kw + w, :].reshape(h * w, cin)
        acc = acc + jnp.dot(patch, w_kd[t * cin:(t + 1) * cin, :],
                            preferred_element_type=jnp.float32)
    return acc


def _conv3_res_kernel(x_ref, w_ref, shift_ref, res_ref, o_ref, s_ref, acc_ref):
    kd = pl.program_id(2)

    @pl.when(kd == 0)
    def _():
        acc_ref[...] = jnp.zeros_like(acc_ref)

    acc = _conv3_taps(x_ref[...], w_ref[...], acc_ref[...])
    acc_ref[...] = acc

    @pl.when(kd == pl.num_programs(2) - 1)
    def _():
        out = acc + shift_ref[...] + res_ref[...]
        o_ref[...] = out
        s_ref[...] = jnp.floor(jnp.clip(out, 0.0, 4.0) + 0.5).astype(s_ref.dtype)


def _conv3_spike_kernel(x_ref, w_ref, shift_ref, s_ref, acc_ref):
    kd = pl.program_id(2)

    @pl.when(kd == 0)
    def _():
        acc_ref[...] = jnp.zeros_like(acc_ref)

    acc = _conv3_taps(x_ref[...], w_ref[...], acc_ref[...])
    acc_ref[...] = acc

    @pl.when(kd == pl.num_programs(2) - 1)
    def _():
        out = acc + shift_ref[...]
        s_ref[...] = jnp.floor(jnp.clip(out, 0.0, 4.0) + 0.5).astype(s_ref.dtype)


def conv3x3_bn(spk_pad, w_bf16, shift, residual=None):
    """spike(prev) (pre-padded, bf16) -> conv(3,1,1) -> BN [+ residual].

    spk_pad:  (n, d+2, h+2, w+2, cin) bf16 spikes, 1-voxel zero halo
    w_bf16:   (3, 9*cin, cout) bf16, BN scale folded in, (kh,kw,cin) row-major
    shift:    (1, cout) f32 BN shift
    residual: (n, d, h*w, cout) f32 or None
    Returns (f32 value or None, bf16 spike of value), both (n, d, h*w, cout).
    """
    n, dp, hp, wp, cin = spk_pad.shape
    do, h, w = dp - 2, hp - 2, wp - 2
    hw = h * w
    cout = w_bf16.shape[-1]
    assert w_bf16.shape == (3, 9 * cin, cout)

    grid = (n, do, 3)
    x_spec = pl.BlockSpec((None, None, hp, wp, cin),
                          lambda b, od, kd: (b, od + kd, 0, 0, 0))
    w_spec = pl.BlockSpec((None, 9 * cin, cout), lambda b, od, kd: (kd, 0, 0))
    sh_spec = pl.BlockSpec((1, cout), lambda b, od, kd: (0, 0))
    o_spec = pl.BlockSpec((None, None, hw, cout), lambda b, od, kd: (b, od, 0, 0))

    flops = 2 * n * do * hw * 27 * cin * cout
    out_bytes = n * do * hw * cout * (2 if residual is None else 2 + 4 + 4)
    bytes_accessed = (n * do * 3 * hp * wp * cin * 2      # rows re-read k times
                      + 27 * cin * cout * 2 + cout * 4 + out_bytes)

    cp = pltpu.CompilerParams(
        dimension_semantics=("parallel", "parallel", "arbitrary"),
        vmem_limit_bytes=VMEM_LIMIT)
    scratch = [pltpu.VMEM((hw, cout), jnp.float32)]
    cost = pl.CostEstimate(flops=flops, transcendentals=0,
                           bytes_accessed=bytes_accessed)

    if residual is not None:
        val, spk = pl.pallas_call(
            _conv3_res_kernel,
            out_shape=(jax.ShapeDtypeStruct((n, do, hw, cout), jnp.float32),
                       jax.ShapeDtypeStruct((n, do, hw, cout), jnp.bfloat16)),
            grid=grid,
            in_specs=[x_spec, w_spec, sh_spec, o_spec],
            out_specs=(o_spec, o_spec),
            scratch_shapes=scratch,
            compiler_params=cp,
            cost_estimate=cost,
        )(spk_pad, w_bf16, shift, residual)
        return val, spk

    spk = pl.pallas_call(
        _conv3_spike_kernel,
        out_shape=jax.ShapeDtypeStruct((n, do, hw, cout), jnp.bfloat16),
        grid=grid,
        in_specs=[x_spec, w_spec, sh_spec],
        out_specs=o_spec,
        scratch_shapes=scratch,
        compiler_params=cp,
        cost_estimate=cost,
    )(spk_pad, w_bf16, shift)
    return None, spk


def _pad_spike(spk_5d):
    """1-voxel zero halo around the spatial dims of a bf16 spike tensor."""
    return jnp.pad(spk_5d, ((0, 0), (1, 1), (1, 1), (1, 1), (0, 0)))


# --------------------------------------------------------------------------- #
# Parameters (deterministic init; BN scale folded into bf16 weights)
# --------------------------------------------------------------------------- #
def _bn_params(key, c, eps=1e-3):
    k1, k2, k3, k4 = jax.random.split(key, 4)
    gamma = 1.0 + 0.1 * jax.random.normal(k1, (c,), jnp.float32)
    beta = 0.1 * jax.random.normal(k2, (c,), jnp.float32)
    mean = 0.1 * jax.random.normal(k3, (c,), jnp.float32)
    var = 1.0 + 0.1 * jnp.abs(jax.random.normal(k4, (c,), jnp.float32))
    scale = gamma / jnp.sqrt(var + eps)
    shift = beta - mean * scale
    return scale.reshape(1, c), shift.reshape(1, c)


def make_params(key, in_channels, embed_channels, depth):
    params = {}
    C = embed_channels
    key, kw, kb = jax.random.split(key, 3)
    w_down = 0.1 * jax.random.normal(kw, (2, 2, 2, in_channels, C), jnp.float32)
    scale, shift = _bn_params(kb, C)
    params["down_w"] = (w_down.reshape(8 * in_channels, C) * scale).astype(jnp.bfloat16)
    params["down_shift"] = shift

    blocks = []
    for _ in range(depth):
        blk = {}
        for j in (1, 2, 3):
            key, kw, kb = jax.random.split(key, 3)
            wj = 0.05 * jax.random.normal(kw, (3, 3, 3, C, C), jnp.float32)
            scale, shift = _bn_params(kb, C)
            blk[f"w{j}"] = ((wj.reshape(27 * C, C) * scale)
                            .astype(jnp.bfloat16).reshape(3, 9 * C, C))
            blk[f"b{j}"] = shift
        blocks.append(blk)
    params["blocks"] = blocks
    return params


# --------------------------------------------------------------------------- #
# DonwBlock forward (Pallas path; Multispike fused into every conv epilogue)
# --------------------------------------------------------------------------- #
def down_block_forward(x, params):
    n, d0, h0, w0, _ = x.shape
    do, ho, wo = d0 // 2, h0 // 2, w0 // 2
    C = params["down_w"].shape[-1]
    hw = ho * wo

    spk0 = multispike(x)                                   # Pallas Multispike kernel
    val5, spk = down_conv_bn_spike(spk0, params["down_w"], params["down_shift"])
    val = val5.reshape(n, do, hw, C)                       # free reshape

    for blk in params["blocks"]:
        y1_val, y1_spk = conv3x3_bn(_pad_spike(spk), blk["w1"], blk["b1"],
                                    residual=val)
        _, t_spk = conv3x3_bn(_pad_spike(y1_spk.reshape(n, do, ho, wo, C)),
                              blk["w2"], blk["b2"], residual=None)
        val, x_spk = conv3x3_bn(_pad_spike(t_spk.reshape(n, do, ho, wo, C)),
                                blk["w3"], blk["b3"], residual=y1_val)
        spk = x_spk.reshape(n, do, ho, wo, C)
    return val.reshape(n, do, ho, wo, C)


# --------------------------------------------------------------------------- #
# Pure-JAX reference (same bf16 folded weights -> numerically aligned)
# --------------------------------------------------------------------------- #
def _ref_spike_conv_bn(x, w5d, shift, residual, *, stride, pad):
    spk = jnp.floor(jnp.clip(x, 0.0, 4.0) + 0.5)
    out = lax.conv_general_dilated(
        spk, w5d, window_strides=(stride,) * 3, padding=[(pad, pad)] * 3,
        dimension_numbers=("NDHWC", "DHWIO", "NDHWC"),
        precision=lax.Precision.HIGHEST)
    out = out + shift.reshape(1, 1, 1, 1, -1)
    if residual is not None:
        out = out + residual
    return out


def ref_forward(x, params):
    cin = x.shape[-1]
    C = params["down_w"].shape[-1]
    w_down = params["down_w"].astype(jnp.float32).reshape(2, 2, 2, cin, C)
    x = _ref_spike_conv_bn(x, w_down, params["down_shift"], None, stride=2, pad=0)
    for blk in params["blocks"]:
        w1, w2, w3 = (blk[f"w{j}"].astype(jnp.float32).reshape(3, 3, 3, C, C)
                      for j in (1, 2, 3))
        y1 = _ref_spike_conv_bn(x, w1, blk["b1"], x, stride=1, pad=1)
        t = _ref_spike_conv_bn(y1, w2, blk["b2"], None, stride=1, pad=1)
        x = _ref_spike_conv_bn(t, w3, blk["b3"], y1, stride=1, pad=1)
    return x


# --------------------------------------------------------------------------- #
if __name__ == "__main__":
    key = jax.random.PRNGKey(0)
    k_x, k_p = jax.random.split(key)

    N, D, H, W = 2, 8, 8, 8
    in_channels, embed_channels, depth = 4, 8, 2

    # dense voxel-grid features (every voxel active), channels-last
    x = 2.0 * jax.random.normal(k_x, (N, D, H, W, in_channels), jnp.float32)
    params = make_params(k_p, in_channels, embed_channels, depth)

    # 1) direct check of the Multispike kernel itself (the module under test)
    spk = jax.block_until_ready(multispike(x))
    spk_ref = jnp.floor(jnp.clip(x, 0.0, 4.0) + 0.5)
    assert jnp.array_equal(spk.astype(jnp.float32), spk_ref), "Multispike mismatch"

    # 2) full DonwBlock pipeline check (spike fused into conv epilogues)
    out = jax.block_until_ready(jax.jit(down_block_forward)(x, params))
    assert out.shape == (N, D // 2, H // 2, W // 2, embed_channels), out.shape

    ref = jax.block_until_ready(jax.jit(ref_forward)(x, params))
    if not jnp.allclose(out, ref, rtol=2e-3, atol=2e-3):
        max_err = float(jnp.max(jnp.abs(out - ref)))
        raise AssertionError(f"Pallas output mismatch, max abs err = {max_err}")

    print("KERNEL_OK")
</pallas_src>

<mosaic_0001>
module attributes {stable_mosaic.version = 11 : i64} {
  func.func @_multispike_kernel(%arg0: i32, %arg1: memref<8x128xf32, #tpu.memory_space<vmem>>, %arg2: memref<8x128xbf16, #tpu.memory_space<vmem>>) attributes {dimension_semantics = [#tpu.dimension_semantics<parallel>], iteration_bounds = array<i64: 4>, scalar_prefetch = 0 : i64, scratch_operands = 0 : i64, tpu.core_type = #tpu.core_type<tc>, window_params = [{transform_indices = @transform_0, window_bounds = array<i64: 8, 128>}, {transform_indices = @transform_1, window_bounds = array<i64: 8, 128>}]} {
    %c0 = arith.constant 0 : index
    %c0_0 = arith.constant 0 : index
    %0 = vector.load %arg1[%c0, %c0_0] : memref<8x128xf32, #tpu.memory_space<vmem>>, vector<8x128xf32>
    %cst = arith.constant 0.000000e+00 : f32
    %cst_1 = arith.constant 4.000000e+00 : f32
    %1 = vector.broadcast %cst : f32 to vector<8x128xf32>
    %2 = arith.maximumf %1, %0 : vector<8x128xf32>
    %3 = vector.broadcast %cst_1 : f32 to vector<8x128xf32>
    %4 = arith.minimumf %3, %2 : vector<8x128xf32>
    %cst_2 = arith.constant 5.000000e-01 : f32
    %5 = vector.broadcast %cst_2 : f32 to vector<8x128xf32>
    %6 = arith.addf %4, %5 : vector<8x128xf32>
    %7 = math.floor %6 : vector<8x128xf32>
    %8 = arith.truncf %7 : vector<8x128xf32> to vector<8x128xbf16>
    %c0_3 = arith.constant 0 : index
    %c0_4 = arith.constant 0 : index
    %9 = vector.load %arg2[%c0_3, %c0_4] : memref<8x128xbf16, #tpu.memory_space<vmem>>, vector<8x128xbf16>
    tpu.vector_store %arg2[%c0_3, %c0_4], %8 {strides = array<i32>} : memref<8x128xbf16, #tpu.memory_space<vmem>>, vector<8x128xbf16>,
    return
  }
  func.func @transform_0(%arg0: i32) -> (i32, i32) {
    %c0_i32 = arith.constant 0 : i32
    %c0_i32_0 = arith.constant 0 : i32
    return %arg0, %c0_i32 : i32, i32
  }
  func.func @transform_1(%arg0: i32) -> (i32, i32) {
    %c0_i32 = arith.constant 0 : i32
    %c0_i32_0 = arith.constant 0 : i32
    return %arg0, %c0_i32 : i32, i32
  }
}

</mosaic_0001>

<bundles_post_ra>
// kernel: tpu_custom_call.1
= control target key start
LH: loop header
LB: loop body
LE: loop exit
PB: predicated region body
PF: predicated region fallthrough
CT: control target
= control target key end

     0   :  { %6 = vsyncpa [#allocation3], 0  ;;  %s527_s0 = inlined_call_operand.hbm [shape: f32[32,128], index: 0, kind: input, shape index: {}]   ;;  %s528_s1 = inlined_call_operand.hbm [shape: bf16[32,128], index: 1, kind: output, shape index: {}]  }
   0x1   :  { %8 = vsyncpa [#allocation3 + $0x1], 0 }
   0x2   :  { %9 = vsyncpa [#allocation4], 0 }
   0x3   :  { %11 = vsyncpa [#allocation4 + $0x1], 0  ;;  %s387_s6 = smov 0   ;;  %s389_s7 = smov 0  }
   0x4   :  { %s391_s8 = smov 0   ;;  %s393_s9 = smov 0  }
   0x5 LB: > { %s408_s10 = sadd.s32 4294967295, %s373_s9   ;;  %s223_s11 = sadd.s32 4294967294, %s373_s9   ;;  %s373_s9 = sphi %s393_s9, %s544_s9   ;;  %s369_s8 = sphi %s391_s8, %s543_s8   ;;  %s365_s7 = sphi %s389_s7, %s542_s7   ;;  %s361_s6 = sphi %s387_s6, %s541_s6  }
   0x6   : > { %s412_s12 = sadd.s32 1, %s373_s9   ;;  %s24_s13 = sadd.s32 1, %s369_s8 }
   0x7   : > { %s21_s14 = ssub.s32 %s373_s9, %s412_s12  ;;  %p31_p0 = scmp.ne.s32.totalorder %s369_s8, %s365_s7 }
   0x8   : > { %p22_p1 = scmp.eq.s32.totalorder %s21_s14, 0  ;;  %p32_p2 = scmp.eq.s32.totalorder %s373_s9, 0 }
   0x9   : > { %p37_p3 = scmp.ne.s32.totalorder %s365_s7, %s361_s6  ;;  %p38_p4 = scmp.eq.s32.totalorder %s408_s10, 0 }
   0xa   : > { %s424_s15 = scalar_select %p22_p1, %s369_s8, %s24_s13  }
   0xb   : > { %p426_p5 = por %p32_p2, %p31_p0  ;;  %p430_p6 = por %p38_p4, %p37_p3 }
   0xc   : > { %p61_p7 = scmp.eq.s32.totalorder %s408_s10, 3  ;;  %p67_p8 = scmp.eq.s32.totalorder %s223_s11, 3 }
   0xd   : > { %s532_s17 = scalar_select %p430_p6, 1, 0 }
   0xe   : > { %p247_p9 = scmp.lt.s32.totalorder %s373_s9, 4  ;;  %p436_p10 = por %p61_p7, %p31_p0 }
   0xf   : > { %p440_p11 = por %p67_p8, %p37_p3  ;;  %s87_s20 = sand.u32 1, %s369_s8  }
  0x10   : > { %s533_s18 = scalar_select %p436_p10, 1, 0 }
  0x11   : > { %s534_s19 = scalar_select %p440_p11, 1, 0 }
  0x12   : > { %s227_s21 = sshll.u32 %s373_s9, 7  ;;  %s226_s22 = sshll.u32 %s87_s20, 3 }
  0x13   : > { %s449_s25 = scalar_lea.hbm %s527_s0, %s227_s21  ;;  %s91_s26 = scalar_lea.vmem [#allocation2], %s226_s22 }
  0x14   : > { %s98_s27 = sshll.u32 %s91_s26, 4  ;;  %p453_p12 = pnand %p247_p9, %p426_p5  ;;  %s457_s27 = int_to_ptr.vmem [resolvable:$true] %s98_s27 }
  0x15   : > { %s88_s29 = scalar_lea.sflag [#allocation3], %s87_s20  ;;  %s281_s30 = scalar_lea.hbm %s449_s25, 128 }
  0x16   : > { %p282_p1 = scmp.ne.s32.totalorder %s449_s25, %s281_s30  ;;  %p283_p2 = pneg %p453_p12 }
  0x17   : > { %s286_s4 = scalar_lea.hbm %s527_s0, 512  ;;  %p287_p5 = scmp.lt.s32.totalorder %s449_s25, %s527_s0 }
  0x18   : > { %p284_p3 = pnand %p283_p2, %p282_p1  ;;  %p288_p7 = scmp.lt.s32.totalorder %s286_s4, %s281_s30 }
  0x1a   : > { %p285_p4 = pneg %p284_p3  ;;  %p289_p8 = por %p288_p7, %p287_p5 }
  0x1c   : > { %p290_p9 = pnand %p289_p8, %p285_p4 }
  0x1e   : > { %293 = shalt.err (!%p290_p9)
}
  0x1f   : > { %s294_s13 = scalar_lea.vmem %s457_s27, 128  ;;  %s375_s14 = smov [#allocation2]  }
  0x20   : > { %p295_p13 = scmp.ne.s32.totalorder %s457_s27, %s294_s13  ;;  %s299_s16 = sshll.u32 %s375_s14, 4  ;;  %s300_s16 = int_to_ptr.vmem [resolvable:$false] %s299_s16 }
  0x21   : > { %s301_s20 = scalar_lea.vmem %s300_s16, 256  ;;  %p302_p3 = scmp.lt.s32.totalorder %s457_s27, %s300_s16 }
  0x22   : > { %p297_p0 = pnand %p295_p13, %p283_p2  ;;  %p303_p11 = scmp.lt.s32.totalorder %s301_s20, %s294_s13 }
  0x24   : > { %p298_p1 = pneg %p297_p0  ;;  %p304_p10 = por %p303_p11, %p302_p3 }
  0x26   : > { %p305_p6 = pnand %p304_p10, %p298_p1 }
  0x28   : > { %308 = shalt.err (!%p305_p6)
}
  0x29   : > { %242 = dma.hbm_to_vmem [thread:$0]  (!%p453_p12), %s449_s25, 128, %s457_s27, %s88_s29  }
  0x2a   : > { %p536_p4 = scmp.lt.s32.totalorder %s373_s9, 5  ;;  %p537_p5 = scmp.ge.s32.totalorder %s373_s9, 1 }
  0x2c   : > { %p104_p13 = pnand %p537_p5, %p536_p4 }
  0x2d   : > { %s484_s21 = sand.u32 (!%p104_p13), 1, %s365_s7   ;;  %p538_p6 = scmp.ne.s32.totalorder (!%p104_p13), %s532_s17, 0 }
  0x2e   : > { %107 = sbr.rel (%p104_p13) target bundleno = 77 (0x4d), region = 24  ;;  %s229_s22 = sshll.u32 (!%p104_p13), %s484_s21, 3 }
  0x2f   : > { %s110_s23 = scalar_lea.sflag (!%p104_p13), [#allocation3], %s484_s21  ;;  %s113_s24 = scalar_lea.vmem (!%p104_p13), [#allocation2], %s229_s22 }
  0x33   : > { %352 = dma.done.wait (%p538_p6), %s110_s23, 128  }
  0x34   : > { %354 = vsyncadd (%p538_p6), %s110_s23, 4294967168  ;;  %s230_s25 = sshll.u32 %s484_s21, 2  ;;  %v132_v0 = vld [vmem:[%s113_s24] sm:$0xff]  ;;  %s232_s28 = sshll.u32 %s408_s10, 6 }
  0x35   : > { %v133_v1 = vmax.f32 %v132_v0, 0.0  ;;  %s131_s26 = scalar_lea.vmem [#allocation5], %s230_s25  ;;  %s151_s17 = scalar_lea.hbm %s528_s1, %s232_s28 }
  0x36   : > { %s153_s27 = sshll.u32 %s131_s26, 4  ;;  %s140_s2 = scalar_lea.sflag [#allocation4], %s484_s21  ;;  %s154_s27 = int_to_ptr.vmem [resolvable:$true] %s153_s27 }
  0x37   : > { %v134_v2 = vmin.f32 %v133_v1, 4.0  ;;  %s309_s3 = scalar_lea.vmem %s154_s27, 64  ;;  %p539_p11 = scmp.ne.s32.totalorder %s533_s18, 0 }
  0x38   : > { %p310_p10 = scmp.ne.s32.totalorder %s154_s27, %s309_s3  ;;  %s376_s4 = smov [#allocation5]  }
  0x39   : > { %v135_v3 = vadd.f32 0.5, %v134_v2  ;;  %s313_s5 = sshll.u32 %s376_s4, 4  ;;  %s314_s5 = int_to_ptr.vmem [resolvable:$false] %s313_s5 }
  0x3a   : > { %p311_p12 = pnand %p310_p10, %p539_p11  ;;  %s315_s11 = scalar_lea.vmem %s314_s5, 128 }
  0x3b   : > { %v136_v4 = vfloor.f32 %v135_v3  ;;  %p316_p2 = scmp.lt.s32.totalorder %s154_s27, %s314_s5  ;;  %p317_p7 = scmp.lt.s32.totalorder %s315_s11, %s309_s3 }
  0x3c   : > { %p312_p0 = pneg %p311_p12 }
  0x3d   : > { %v137_v5 = vpack.c.bf16 %v136_v4, %v136_v4  ;;  %p318_p8 = por %p317_p7, %p316_p2 }
  0x3f   : > { %138 = vst [vmem:[%s131_s26] sm:$0xf] %v137_v5  ;;  %p319_p9 = pnand %p318_p8, %p312_p0 }
  0x41   : > { %322 = shalt.err (!%p319_p9)
}
  0x42   : > { %s323_s10 = scalar_lea.hbm %s151_s17, 64  ;;  %s327_s16 = scalar_lea.hbm %s528_s1, 256 }
  0x43   : > { %p324_p1 = scmp.ne.s32.totalorder %s151_s17, %s323_s10  ;;  %p328_p5 = scmp.lt.s32.totalorder %s151_s17, %s528_s1 }
  0x44   : > { %p329_p13 = scmp.lt.s32.totalorder %s327_s16, %s323_s10 }
  0x45   : > { %p325_p3 = pnand %p324_p1, %p539_p11 }
  0x46   : > { %p330_p6 = por %p329_p13, %p328_p5 }
  0x47   : > { %p326_p4 = pneg %p325_p3 }
  0x49   : > { %p331_p10 = pnand %p330_p6, %p326_p4 }
  0x4b   : > { %334 = shalt.err (!%p331_p10)
}
  0x4c   : > { %237 = dma.vmem_to_hbm [thread:$0]  (%p539_p11), %s154_s27, 64, %s151_s17, %s140_s2  }
  0x4d PF: > { %p248_p12 = scmp.ge.s32.totalorder %s373_s9, 2  ;;  %s165_s22 = sand.u32 1, %s361_s6  }
  0x4e   : > { %p540_p0 = scmp.ne.s32.totalorder %s534_s19, 0  ;;  %s166_s23 = scalar_lea.sflag [#allocation4], %s165_s22 }
  0x50   : > { %p244_p2 = pnand %p248_p12, %p540_p0 }
  0x52   : > { %p245_p7 = pneg %p244_p2 }
  0x54   : > { %356 = dma.done.wait (%p245_p7), %s166_s23, 64  }
  0x55   : > { %358 = vsyncadd (%p245_p7), %s166_s23, 4294967232  ;;  %p14_p8 = scmp.ge.s32.totalorder %s412_s12, 6   ;;  %s541_s6 = smov %s365_s7 }
  0x56   : > { %s542_s7 = smov %s369_s8  ;;  %s543_s8 = smov %s424_s15 }
  0x57   : > { %s544_s9 = smov %s412_s12  ;;  %16 = sbr.rel (!%p14_p8) target bundleno = 5 (0x5), region = 69 }
  0x5c   :  { %171 = vsyncpa [#allocation3], 1 }
  0x5d   :  { %173 = vsyncpa [#allocation3 + $0x1], 1 }
  0x5e   :  { %174 = vsyncpa [#allocation4], 1 }
  0x5f   :  { %176 = vsyncpa [#allocation4 + $0x1], 1 }

</bundles_post_ra>
